<compile_context>
chip_gen: v7x
topology: tpu7x:2x2x1
jax: 0.10.0
libtpu: 0.0.40
codegen_flags: <defaults>
</compile_context>

<pallas_src>
import functools

import jax
import jax.numpy as jnp
from jax.experimental import pallas as pl
from jax.experimental.pallas import tpu as pltpu


# ---------------------------------------------------------------------------
# Kernel
# ---------------------------------------------------------------------------
def _attention_kernel(x_ref, wq_ref, wk_ref, wv_ref, wp_ref, b_ref, o_ref, *,
                      num_heads, compute_dtype):
    """One grid step: full attention for a tile of `Bt` batch elements.

    x_ref        : (Bt, N, C)  activation tile (f32)
    wq/wk/wv_ref : (C, C)      per-projection weights, head-major columns,
                               softmax scale pre-folded into wq (compute_dtype)
    wp_ref       : (H, D, C)   output projection, head axis split out (compute_dtype)
    b_ref        : (1, C)      output projection bias (f32)
    o_ref        : (Bt, N, C)
    """
    Bt, N, C = x_ref.shape
    H = num_heads
    D = C // H
    M = Bt * N  # stacked rows for the dense projections (fills the MXU M dim)

    # Stack the batch tile into the matmul M dimension; cast the MXU operand to
    # the compute dtype (bf16 in production) — accumulation stays f32.
    xm = x_ref[...].reshape(M, C).astype(compute_dtype)

    # Dense QKV projections: three (M, C) @ (C, C) MXU matmuls.  Columns are
    # head-major (nn.Linear's (3, H, D) feature order), so per-head data is a
    # static lane slice below — no relayout/transposes needed.
    q = jnp.dot(xm, wq_ref[...], preferred_element_type=jnp.float32)  # scale folded
    k = jnp.dot(xm, wk_ref[...], preferred_element_type=jnp.float32)
    v = jnp.dot(xm, wv_ref[...], preferred_element_type=jnp.float32)

    # Single (M, C) f32 output accumulator: each head's contribution to the
    # output projection is matmul-accumulated here (no (H, M, C) intermediate).
    y = jnp.zeros((M, C), dtype=jnp.float32)

    # Per-head attention on static lane slices (H is a compile-time constant).
    # TODO(synk): for production-sized N, add flash-style query/key tiling
    # (grid axis over query tiles + online-softmax m/l/acc scratch over key
    # tiles) so the (Bt, N, N) score block stays bounded on v7x's 64 MiB VMEM.
    for h in range(H):
        sl = slice(h * D, (h + 1) * D)
        # (M, D) -> (Bt, N, D): pure sublane split, no lane crossing.
        q_h = q[:, sl].reshape(Bt, N, D).astype(compute_dtype)
        k_h = k[:, sl].reshape(Bt, N, D).astype(compute_dtype)
        v_h = v[:, sl].reshape(Bt, N, D).astype(compute_dtype)

        # Scores for this head, batched over the batch tile.
        s = jnp.einsum('bnd,bmd->bnm', q_h, k_h,
                       preferred_element_type=jnp.float32)          # (Bt, N, N)

        # Numerically stable softmax, entirely in f32.  Exact divide: the
        # approximate EUP reciprocal gave ~5e-3 error and failed validation.
        s_max = jnp.max(s, axis=-1, keepdims=True)
        p = jnp.exp(s - s_max)
        p = p / jnp.sum(p, axis=-1, keepdims=True)
        # attn_drop: p=0.0 (module default) -> identity.

        ctx = jnp.einsum('bnm,bmd->bnd', p.astype(compute_dtype), v_h,
                         preferred_element_type=jnp.float32)         # (Bt, N, D)
        ctx = ctx.reshape(M, D).astype(compute_dtype)

        # Head-merge folded into the output projection:
        #   y += ctx_h @ w_proj[h*D:(h+1)*D, :]   (MXU accumulation, f32)
        y = y + jnp.dot(ctx, wp_ref[h], preferred_element_type=jnp.float32)

    y = y + b_ref[0]
    # proj_drop: p=0.0 -> identity.
    o_ref[...] = y.reshape(Bt, N, C).astype(o_ref.dtype)


# ---------------------------------------------------------------------------
# Host-side sizing helpers
# ---------------------------------------------------------------------------
@functools.lru_cache(maxsize=1)
def _vmem_cap_bytes():
    """Scoped-VMEM cap: 75% of the per-core VMEM if queryable, else a v7x-safe
    48 MiB (never request the full 64 MiB — Mosaic needs internal scratch)."""
    fallback = 48 * 1024 * 1024
    try:  # narrow hardware-query probe with a conservative fallback
        cap = getattr(pltpu.get_tpu_info(), "vmem_capacity_bytes", None)
    except Exception:
        return fallback
    return int(0.75 * cap) if cap else fallback


def _tile_vmem_bytes(Bt, N, C, H, cbytes, weight_bufs=1):
    """Rough per-grid-step working-set estimate (bytes)."""
    rows = Bt * N
    return (4 * 4 * rows * C                     # x + out tiles (f32, double-buffered)
            + weight_bufs * 4 * C * C * cbytes   # wq, wk, wv, wp
            + 2 * 4 * C                          # bias
            + 4 * rows * C * 4                   # q, k, v, y (f32)
            + 2 * Bt * N * N * 4                 # per-head scores + probs (f32)
            + rows * (C // H) * (4 + cbytes))    # per-head ctx


def _pick_batch_tile(B, N, target_rows=512, min_steps=4):
    """Batch elements per grid step: prefer >=4 grid steps (v7x: 2 TCs need >=2
    parallel steps each for DMA/compute overlap), then fill the MXU M dim."""
    divisors = [d for d in range(1, B + 1) if B % d == 0]
    cands = divisors
    for steps in (min_steps, 2, 1):
        c = [d for d in divisors if B // d >= steps]
        if c:
            cands = c
            break
    for d in cands:
        if d * N >= target_rows:
            return d
    return cands[-1]


@functools.lru_cache(maxsize=1)
def _single_buffer_supported():
    """Feature-detect `pipeline_mode=pl.Buffered(1)` on a tiny dedicated probe
    kernel.  The real attention pallas_call is never wrapped in a broad except,
    so genuine lowering/runtime errors surface normally."""
    if not hasattr(pl, "Buffered"):
        return False
    try:
        spec = pl.BlockSpec((8, 128), lambda i: (0, 0),
                            pipeline_mode=pl.Buffered(1))
    except TypeError:
        return False

    def _probe_kernel(w_ref, o_ref):
        o_ref[...] = w_ref[...] + 1.0

    try:
        probe = pl.pallas_call(
            _probe_kernel,
            out_shape=jax.ShapeDtypeStruct((8, 128), jnp.float32),
            grid_spec=pltpu.PrefetchScalarGridSpec(
                num_scalar_prefetch=0, grid=(1,),
                in_specs=[spec],
                out_specs=pl.BlockSpec((8, 128), lambda i: (0, 0))),
        )
        jax.jit(probe).lower(jax.ShapeDtypeStruct((8, 128), jnp.float32)).compile()
        return True
    except Exception:
        return False


# ---------------------------------------------------------------------------
# pallas_call builder + public wrapper
# ---------------------------------------------------------------------------
def _build_attention_call(B, N, C, H, Bt, out_dtype, compute_dtype,
                          single_buffer_weights):
    D = C // H
    cbytes = jnp.dtype(compute_dtype).itemsize
    kernel = functools.partial(_attention_kernel, num_heads=H,
                               compute_dtype=compute_dtype)

    # Advisory cost so XLA schedules surrounding ops sensibly.
    cost = pl.CostEstimate(
        flops=2 * B * N * C * (3 * C) + 4 * B * H * N * N * D + 2 * B * N * C * C,
        transcendentals=B * H * N * N,
        bytes_accessed=2 * B * N * C * 4 + 4 * C * C * cbytes + C * 4,
    )

    weight_bufs = 1 if single_buffer_weights else 2
    work = _tile_vmem_bytes(Bt, N, C, H, cbytes, weight_bufs)
    vmem_limit = int(min(_vmem_cap_bytes(), max(32 * 1024 * 1024, 2 * work)))

    def const_spec(shape):
        # Grid-invariant weights/bias: constant index map; single-buffer when the
        # build supports it (halves the weights' VMEM footprint).
        idx = lambda b: (0,) * len(shape)
        if single_buffer_weights:
            return pl.BlockSpec(shape, idx, pipeline_mode=pl.Buffered(1))
        return pl.BlockSpec(shape, idx)

    # TODO(synk): for configs with C % 128 != 0 (like the small test), pad the
    # feature dim host-side so the output store is lane-dense (unmasked vst).
    return pl.pallas_call(
        kernel,
        out_shape=jax.ShapeDtypeStruct((B, N, C), out_dtype),
        grid_spec=pltpu.PrefetchScalarGridSpec(
            num_scalar_prefetch=0,
            grid=(B // Bt,),
            in_specs=[
                pl.BlockSpec((Bt, N, C), lambda b: (b, 0, 0)),  # x tile
                const_spec((C, C)),                              # wq (scale folded)
                const_spec((C, C)),                              # wk
                const_spec((C, C)),                              # wv
                const_spec((H, D, C)),                           # w_proj, head-split
                const_spec((1, C)),                              # proj bias
            ],
            out_specs=pl.BlockSpec((Bt, N, C), lambda b: (b, 0, 0)),
        ),
        compiler_params=pltpu.CompilerParams(
            dimension_semantics=("parallel",),
            vmem_limit_bytes=vmem_limit,
        ),
        cost_estimate=cost,
    )


def attention_pallas(x, w_qkv, w_proj, b_proj, *, num_heads, qk_scale=None,
                     batch_tile=None, compute_dtype=jnp.bfloat16):
    """Forward pass of the PyTorch `Attention` module (with_qkv=True path).

    compute_dtype: dtype of the MXU operands (bf16 by default; f32 for exact
    validation).  Accumulation and softmax math are always f32.
    """
    B, N, C = x.shape
    H = num_heads
    if C % H != 0:
        raise ValueError(f"C={C} must be divisible by num_heads={H}")
    D = C // H
    scale = qk_scale if qk_scale is not None else D ** (-0.5)
    cd = jnp.dtype(compute_dtype)

    # Host-side (one-off) weight restructuring: split the fused qkv weight into
    # per-projection head-major-column weights, fold the softmax scale into the
    # q weight, split the head axis out of the output projection, cast to the
    # MXU compute dtype.
    wq = (w_qkv[:, 0 * C:1 * C] * scale).astype(cd)
    wk = w_qkv[:, 1 * C:2 * C].astype(cd)
    wv = w_qkv[:, 2 * C:3 * C].astype(cd)
    wp = w_proj.reshape(H, D, C).astype(cd)
    b2 = b_proj.reshape(1, C).astype(jnp.float32)

    single_buffer = _single_buffer_supported()
    weight_bufs = 1 if single_buffer else 2

    if batch_tile is None:
        Bt = _pick_batch_tile(B, N)
        # Shrink the batch tile if its working set would overflow the scoped
        # VMEM budget (matters on v7x's 64 MiB/TC).
        divisors = sorted(d for d in range(1, B + 1) if B % d == 0)
        cap = _vmem_cap_bytes()
        while Bt > 1 and _tile_vmem_bytes(Bt, N, C, H, cd.itemsize,
                                          weight_bufs) > 0.6 * cap:
            Bt = max(d for d in divisors if d < Bt)
    else:
        Bt = batch_tile
    if B % Bt != 0:
        raise ValueError(f"batch_tile={Bt} must divide B={B}")

    # TODO(synk): with_qkv=False variant (q = k = v = reshaped x, no projections)
    # is not implemented; the module default (with_qkv=True) is what this covers.
    call = _build_attention_call(B, N, C, H, Bt, x.dtype, cd, single_buffer)
    return call(x, wq, wk, wv, wp, b2)


# ---------------------------------------------------------------------------
# Pure-JAX references
# ---------------------------------------------------------------------------
def attention_reference(x, w_qkv, w_proj, b_proj, *, num_heads, qk_scale=None):
    """Exact f32 reference mirroring the PyTorch forward."""
    B, N, C = x.shape
    H = num_heads
    D = C // H
    scale = qk_scale if qk_scale is not None else D ** (-0.5)
    qkv = x @ w_qkv
    qkv = qkv.reshape(B, N, 3, H, D).transpose(2, 0, 3, 1, 4)   # (3, B, H, N, D)
    q, k, v = qkv[0], qkv[1], qkv[2]
    attn = jnp.einsum('bhnd,bhmd->bhnm', q, k) * scale
    attn = jax.nn.softmax(attn, axis=-1)
    ctx = jnp.einsum('bhnm,bhmd->bhnd', attn, v)
    ctx = ctx.transpose(0, 2, 1, 3).reshape(B, N, C)
    return ctx @ w_proj + b_proj


def attention_reference_mixed(x, w_qkv, w_proj, b_proj, *, num_heads,
                              qk_scale=None, compute_dtype=jnp.bfloat16):
    """Same math, but with the kernel's operand-precision choices (compute_dtype
    MXU operands, f32 accumulation and softmax) applied at the same points —
    used to validate the bf16 kernel with a tight-ish tolerance."""
    B, N, C = x.shape
    H = num_heads
    D = C // H
    scale = qk_scale if qk_scale is not None else D ** (-0.5)
    cd = jnp.dtype(compute_dtype)
    xq = x.astype(cd)
    wq = (w_qkv[:, :C] * scale).astype(cd)
    wk = w_qkv[:, C:2 * C].astype(cd)
    wv = w_qkv[:, 2 * C:].astype(cd)

    def project(w):
        y = jnp.einsum('bnc,ck->bnk', xq, w, preferred_element_type=jnp.float32)
        return y.reshape(B, N, H, D).transpose(0, 2, 1, 3)       # (B, H, N, D)

    q, k, v = project(wq), project(wk), project(wv)
    s = jnp.einsum('bhnd,bhmd->bhnm', q.astype(cd), k.astype(cd),
                   preferred_element_type=jnp.float32)
    p = jax.nn.softmax(s, axis=-1)
    ctx = jnp.einsum('bhnm,bhmd->bhnd', p.astype(cd), v.astype(cd),
                     preferred_element_type=jnp.float32)
    ctx = ctx.transpose(0, 2, 1, 3).reshape(B, N, C)
    out = jnp.einsum('bnc,ck->bnk', ctx.astype(cd), w_proj.astype(cd),
                     preferred_element_type=jnp.float32)
    return out + b_proj


# ---------------------------------------------------------------------------
# Self-test
# ---------------------------------------------------------------------------
if __name__ == "__main__":
    num_heads = 4

    def _make_inputs(key, B, N, C):
        kx, kw1, kw2, kb = jax.random.split(key, 4)
        x = jax.random.normal(kx, (B, N, C), dtype=jnp.float32)
        w_qkv = jax.random.normal(kw1, (C, 3 * C), dtype=jnp.float32) * (C ** -0.5)
        w_proj = jax.random.normal(kw2, (C, C), dtype=jnp.float32) * (C ** -0.5)
        b_proj = jax.random.normal(kb, (C,), dtype=jnp.float32) * 0.01
        return x, w_qkv, w_proj, b_proj

    root = jax.random.PRNGKey(0)
    k1, k2 = jax.random.split(root)

    # Case 1: f32 MXU operands vs. the exact PyTorch-mirroring reference.
    # Tight tolerance proves the attention math / head layout / exact softmax.
    x, w_qkv, w_proj, b_proj = _make_inputs(k1, B=2, N=8, C=32)
    out = jax.block_until_ready(attention_pallas(
        x, w_qkv, w_proj, b_proj, num_heads=num_heads,
        compute_dtype=jnp.float32))
    ref = attention_reference(x, w_qkv, w_proj, b_proj, num_heads=num_heads)
    assert out.shape == x.shape
    err = float(jnp.max(jnp.abs(out - ref)))
    assert err < 1e-3, f"f32 kernel mismatch vs exact reference: max|diff|={err}"

    # Case 2: bf16 MXU operands (the production configuration), validated
    # against the precision-mirroring reference (differences are only f32
    # accumulation order / rare bf16 rounding-tie flips).
    x, w_qkv, w_proj, b_proj = _make_inputs(k2, B=4, N=8, C=32)
    out = jax.block_until_ready(attention_pallas(
        x, w_qkv, w_proj, b_proj, num_heads=num_heads,
        compute_dtype=jnp.bfloat16))
    ref_mixed = attention_reference_mixed(
        x, w_qkv, w_proj, b_proj, num_heads=num_heads,
        compute_dtype=jnp.bfloat16)
    err = float(jnp.max(jnp.abs(out - ref_mixed)))
    assert err < 2e-2, f"bf16 kernel mismatch vs bf16 reference: max|diff|={err}"

    print("KERNEL_OK")
</pallas_src>

<mosaic_0001>
module attributes {stable_mosaic.version = 11 : i64} {
  func.func @_attention_kernel(%arg0: i32, %arg1: memref<1x8x32xf32, #tpu.memory_space<vmem>>, %arg2: memref<32x32xf32, #tpu.memory_space<vmem>>, %arg3: memref<32x32xf32, #tpu.memory_space<vmem>>, %arg4: memref<32x32xf32, #tpu.memory_space<vmem>>, %arg5: memref<4x8x32xf32, #tpu.memory_space<vmem>>, %arg6: memref<1x32xf32, #tpu.memory_space<vmem>>, %arg7: memref<1x8x32xf32, #tpu.memory_space<vmem>>) attributes {dimension_semantics = [#tpu.dimension_semantics<parallel>], iteration_bounds = array<i64: 2>, scalar_prefetch = 0 : i64, scratch_operands = 0 : i64, tpu.core_type = #tpu.core_type<tc>, window_params = [{transform_indices = @transform_0, window_bounds = array<i64: 1, 8, 32>}, {pipeline_mode = #tpu.pipeline_mode<synchronous>, transform_indices = @transform_1, window_bounds = array<i64: 32, 32>}, {pipeline_mode = #tpu.pipeline_mode<synchronous>, transform_indices = @transform_2, window_bounds = array<i64: 32, 32>}, {pipeline_mode = #tpu.pipeline_mode<synchronous>, transform_indices = @transform_3, window_bounds = array<i64: 32, 32>}, {pipeline_mode = #tpu.pipeline_mode<synchronous>, transform_indices = @transform_4, window_bounds = array<i64: 4, 8, 32>}, {pipeline_mode = #tpu.pipeline_mode<synchronous>, transform_indices = @transform_5, window_bounds = array<i64: 1, 32>}, {transform_indices = @transform_6, window_bounds = array<i64: 1, 8, 32>}]} {
    %c0 = arith.constant 0 : index
    %c0_0 = arith.constant 0 : index
    %c0_1 = arith.constant 0 : index
    %0 = vector.load %arg1[%c0, %c0_0, %c0_1] : memref<1x8x32xf32, #tpu.memory_space<vmem>>, vector<1x8x32xf32>
    %1 = vector.shape_cast %0 : vector<1x8x32xf32> to vector<8x32xf32>
    %c0_2 = arith.constant 0 : index
    %c0_3 = arith.constant 0 : index
    %2 = vector.load %arg2[%c0_2, %c0_3] : memref<32x32xf32, #tpu.memory_space<vmem>>, vector<32x32xf32>
    %cst = arith.constant dense<0.000000e+00> : vector<8x32xf32>
    %3 = tpu.matmul %1, %2, %cst {dimension_numbers = #tpu.dot_dimension_numbers<[1], [0], [0], [1], [0, 0, 1, 1], [], []>} : vector<8x32xf32>, vector<32x32xf32>, vector<8x32xf32> -> vector<8x32xf32>
    %c0_4 = arith.constant 0 : index
    %c0_5 = arith.constant 0 : index
    %4 = vector.load %arg3[%c0_4, %c0_5] : memref<32x32xf32, #tpu.memory_space<vmem>>, vector<32x32xf32>
    %cst_6 = arith.constant dense<0.000000e+00> : vector<8x32xf32>
    %5 = tpu.matmul %1, %4, %cst_6 {dimension_numbers = #tpu.dot_dimension_numbers<[1], [0], [0], [1], [0, 0, 1, 1], [], []>} : vector<8x32xf32>, vector<32x32xf32>, vector<8x32xf32> -> vector<8x32xf32>
    %c0_7 = arith.constant 0 : index
    %c0_8 = arith.constant 0 : index
    %6 = vector.load %arg4[%c0_7, %c0_8] : memref<32x32xf32, #tpu.memory_space<vmem>>, vector<32x32xf32>
    %cst_9 = arith.constant dense<0.000000e+00> : vector<8x32xf32>
    %7 = tpu.matmul %1, %6, %cst_9 {dimension_numbers = #tpu.dot_dimension_numbers<[1], [0], [0], [1], [0, 0, 1, 1], [], []>} : vector<8x32xf32>, vector<32x32xf32>, vector<8x32xf32> -> vector<8x32xf32>
    %cst_10 = arith.constant 0.000000e+00 : f32
    %8 = vector.broadcast %cst_10 : f32 to vector<8x32xf32>
    %9 = vector.extract_strided_slice %3 {offsets = [0, 0], sizes = [8, 8], strides = [1, 1]} : vector<8x32xf32> to vector<8x8xf32>
    %10 = vector.shape_cast %9 : vector<8x8xf32> to vector<1x8x8xf32>
    %11 = vector.extract_strided_slice %5 {offsets = [0, 0], sizes = [8, 8], strides = [1, 1]} : vector<8x32xf32> to vector<8x8xf32>
    %12 = vector.shape_cast %11 : vector<8x8xf32> to vector<1x8x8xf32>
    %13 = vector.extract_strided_slice %7 {offsets = [0, 0], sizes = [8, 8], strides = [1, 1]} : vector<8x32xf32> to vector<8x8xf32>
    %14 = vector.shape_cast %13 : vector<8x8xf32> to vector<1x8x8xf32>
    "tpu.trace_start"() <{level = 10 : i32, message = "bnd,bmd->bnm"}> : () -> ()
    %cst_11 = arith.constant dense<0.000000e+00> : vector<1x8x8xf32>
    %15 = tpu.matmul %10, %12, %cst_11 {dimension_numbers = #tpu.dot_dimension_numbers<[2], [2], [1], [1], [0, 0, 0, 1, 1, 1], [0], [0]>} : vector<1x8x8xf32>, vector<1x8x8xf32>, vector<1x8x8xf32> -> vector<1x8x8xf32>
    "tpu.trace_stop"() : () -> ()
    %cst_12 = arith.constant dense<0xFF800000> : vector<1x8xf32>
    %16 = vector.multi_reduction <maximumf>, %15, %cst_12 [2] : vector<1x8x8xf32> to vector<1x8xf32>
    %17 = vector.shape_cast %16 : vector<1x8xf32> to vector<1x8x1xf32>
    %18 = vector.broadcast %17 : vector<1x8x1xf32> to vector<1x8x8xf32>
    %19 = arith.subf %15, %18 : vector<1x8x8xf32>
    %20 = math.exp %19 : vector<1x8x8xf32>
    %cst_13 = arith.constant dense<0.000000e+00> : vector<1x8xf32>
    %21 = vector.multi_reduction <add>, %20, %cst_13 [2] : vector<1x8x8xf32> to vector<1x8xf32>
    %22 = vector.shape_cast %21 : vector<1x8xf32> to vector<1x8x1xf32>
    %23 = vector.broadcast %22 : vector<1x8x1xf32> to vector<1x8x8xf32>
    %24 = arith.divf %20, %23 : vector<1x8x8xf32>
    "tpu.trace_start"() <{level = 10 : i32, message = "bnm,bmd->bnd"}> : () -> ()
    %cst_14 = arith.constant dense<0.000000e+00> : vector<1x8x8xf32>
    %25 = tpu.matmul %24, %14, %cst_14 {dimension_numbers = #tpu.dot_dimension_numbers<[2], [1], [1], [2], [0, 0, 0, 1, 1, 2], [0], [0]>} : vector<1x8x8xf32>, vector<1x8x8xf32>, vector<1x8x8xf32> -> vector<1x8x8xf32>
    "tpu.trace_stop"() : () -> ()
    %26 = vector.shape_cast %25 : vector<1x8x8xf32> to vector<8x8xf32>
    %c0_15 = arith.constant 0 : index
    %c0_16 = arith.constant 0 : index
    %c0_17 = arith.constant 0 : index
    %27 = vector.load %arg5[%c0_15, %c0_16, %c0_17] : memref<4x8x32xf32, #tpu.memory_space<vmem>>, vector<1x8x32xf32>
    %28 = vector.shape_cast %27 : vector<1x8x32xf32> to vector<8x32xf32>
    %cst_18 = arith.constant dense<0.000000e+00> : vector<8x32xf32>
    %29 = tpu.matmul %26, %28, %cst_18 {dimension_numbers = #tpu.dot_dimension_numbers<[1], [0], [0], [1], [0, 0, 1, 1], [], []>} : vector<8x8xf32>, vector<8x32xf32>, vector<8x32xf32> -> vector<8x32xf32>
    %30 = arith.addf %8, %29 : vector<8x32xf32>
    %31 = vector.extract_strided_slice %3 {offsets = [0, 8], sizes = [8, 8], strides = [1, 1]} : vector<8x32xf32> to vector<8x8xf32>
    %32 = vector.shape_cast %31 : vector<8x8xf32> to vector<1x8x8xf32>
    %33 = vector.extract_strided_slice %5 {offsets = [0, 8], sizes = [8, 8], strides = [1, 1]} : vector<8x32xf32> to vector<8x8xf32>
    %34 = vector.shape_cast %33 : vector<8x8xf32> to vector<1x8x8xf32>
    %35 = vector.extract_strided_slice %7 {offsets = [0, 8], sizes = [8, 8], strides = [1, 1]} : vector<8x32xf32> to vector<8x8xf32>
    %36 = vector.shape_cast %35 : vector<8x8xf32> to vector<1x8x8xf32>
    "tpu.trace_start"() <{level = 10 : i32, message = "bnd,bmd->bnm"}> : () -> ()
    %cst_19 = arith.constant dense<0.000000e+00> : vector<1x8x8xf32>
    %37 = tpu.matmul %32, %34, %cst_19 {dimension_numbers = #tpu.dot_dimension_numbers<[2], [2], [1], [1], [0, 0, 0, 1, 1, 1], [0], [0]>} : vector<1x8x8xf32>, vector<1x8x8xf32>, vector<1x8x8xf32> -> vector<1x8x8xf32>
    "tpu.trace_stop"() : () -> ()
    %cst_20 = arith.constant dense<0xFF800000> : vector<1x8xf32>
    %38 = vector.multi_reduction <maximumf>, %37, %cst_20 [2] : vector<1x8x8xf32> to vector<1x8xf32>
    %39 = vector.shape_cast %38 : vector<1x8xf32> to vector<1x8x1xf32>
    %40 = vector.broadcast %39 : vector<1x8x1xf32> to vector<1x8x8xf32>
    %41 = arith.subf %37, %40 : vector<1x8x8xf32>
    %42 = math.exp %41 : vector<1x8x8xf32>
    %cst_21 = arith.constant dense<0.000000e+00> : vector<1x8xf32>
    %43 = vector.multi_reduction <add>, %42, %cst_21 [2] : vector<1x8x8xf32> to vector<1x8xf32>
    %44 = vector.shape_cast %43 : vector<1x8xf32> to vector<1x8x1xf32>
    %45 = vector.broadcast %44 : vector<1x8x1xf32> to vector<1x8x8xf32>
    %46 = arith.divf %42, %45 : vector<1x8x8xf32>
    "tpu.trace_start"() <{level = 10 : i32, message = "bnm,bmd->bnd"}> : () -> ()
    %cst_22 = arith.constant dense<0.000000e+00> : vector<1x8x8xf32>
    %47 = tpu.matmul %46, %36, %cst_22 {dimension_numbers = #tpu.dot_dimension_numbers<[2], [1], [1], [2], [0, 0, 0, 1, 1, 2], [0], [0]>} : vector<1x8x8xf32>, vector<1x8x8xf32>, vector<1x8x8xf32> -> vector<1x8x8xf32>
    "tpu.trace_stop"() : () -> ()
    %48 = vector.shape_cast %47 : vector<1x8x8xf32> to vector<8x8xf32>
    %c1 = arith.constant 1 : index
    %c0_23 = arith.constant 0 : index
    %c0_24 = arith.constant 0 : index
    %49 = vector.load %arg5[%c1, %c0_23, %c0_24] : memref<4x8x32xf32, #tpu.memory_space<vmem>>, vector<1x8x32xf32>
    %50 = vector.shape_cast %49 : vector<1x8x32xf32> to vector<8x32xf32>
    %cst_25 = arith.constant dense<0.000000e+00> : vector<8x32xf32>
    %51 = tpu.matmul %48, %50, %cst_25 {dimension_numbers = #tpu.dot_dimension_numbers<[1], [0], [0], [1], [0, 0, 1, 1], [], []>} : vector<8x8xf32>, vector<8x32xf32>, vector<8x32xf32> -> vector<8x32xf32>
    %52 = arith.addf %30, %51 : vector<8x32xf32>
    %53 = vector.extract_strided_slice %3 {offsets = [0, 16], sizes = [8, 8], strides = [1, 1]} : vector<8x32xf32> to vector<8x8xf32>
    %54 = vector.shape_cast %53 : vector<8x8xf32> to vector<1x8x8xf32>
    %55 = vector.extract_strided_slice %5 {offsets = [0, 16], sizes = [8, 8], strides = [1, 1]} : vector<8x32xf32> to vector<8x8xf32>
    %56 = vector.shape_cast %55 : vector<8x8xf32> to vector<1x8x8xf32>
    %57 = vector.extract_strided_slice %7 {offsets = [0, 16], sizes = [8, 8], strides = [1, 1]} : vector<8x32xf32> to vector<8x8xf32>
    %58 = vector.shape_cast %57 : vector<8x8xf32> to vector<1x8x8xf32>
    "tpu.trace_start"() <{level = 10 : i32, message = "bnd,bmd->bnm"}> : () -> ()
    %cst_26 = arith.constant dense<0.000000e+00> : vector<1x8x8xf32>
    %59 = tpu.matmul %54, %56, %cst_26 {dimension_numbers = #tpu.dot_dimension_numbers<[2], [2], [1], [1], [0, 0, 0, 1, 1, 1], [0], [0]>} : vector<1x8x8xf32>, vector<1x8x8xf32>, vector<1x8x8xf32> -> vector<1x8x8xf32>
    "tpu.trace_stop"() : () -> ()
    %cst_27 = arith.constant dense<0xFF800000> : vector<1x8xf32>
    %60 = vector.multi_reduction <maximumf>, %59, %cst_27 [2] : vector<1x8x8xf32> to vector<1x8xf32>
    %61 = vector.shape_cast %60 : vector<1x8xf32> to vector<1x8x1xf32>
    %62 = vector.broadcast %61 : vector<1x8x1xf32> to vector<1x8x8xf32>
    %63 = arith.subf %59, %62 : vector<1x8x8xf32>
    %64 = math.exp %63 : vector<1x8x8xf32>
    %cst_28 = arith.constant dense<0.000000e+00> : vector<1x8xf32>
    %65 = vector.multi_reduction <add>, %64, %cst_28 [2] : vector<1x8x8xf32> to vector<1x8xf32>
    %66 = vector.shape_cast %65 : vector<1x8xf32> to vector<1x8x1xf32>
    %67 = vector.broadcast %66 : vector<1x8x1xf32> to vector<1x8x8xf32>
    %68 = arith.divf %64, %67 : vector<1x8x8xf32>
    "tpu.trace_start"() <{level = 10 : i32, message = "bnm,bmd->bnd"}> : () -> ()
    %cst_29 = arith.constant dense<0.000000e+00> : vector<1x8x8xf32>
    %69 = tpu.matmul %68, %58, %cst_29 {dimension_numbers = #tpu.dot_dimension_numbers<[2], [1], [1], [2], [0, 0, 0, 1, 1, 2], [0], [0]>} : vector<1x8x8xf32>, vector<1x8x8xf32>, vector<1x8x8xf32> -> vector<1x8x8xf32>
    "tpu.trace_stop"() : () -> ()
    %70 = vector.shape_cast %69 : vector<1x8x8xf32> to vector<8x8xf32>
    %c2 = arith.constant 2 : index
    %c0_30 = arith.constant 0 : index
    %c0_31 = arith.constant 0 : index
    %71 = vector.load %arg5[%c2, %c0_30, %c0_31] : memref<4x8x32xf32, #tpu.memory_space<vmem>>, vector<1x8x32xf32>
    %72 = vector.shape_cast %71 : vector<1x8x32xf32> to vector<8x32xf32>
    %cst_32 = arith.constant dense<0.000000e+00> : vector<8x32xf32>
    %73 = tpu.matmul %70, %72, %cst_32 {dimension_numbers = #tpu.dot_dimension_numbers<[1], [0], [0], [1], [0, 0, 1, 1], [], []>} : vector<8x8xf32>, vector<8x32xf32>, vector<8x32xf32> -> vector<8x32xf32>
    %74 = arith.addf %52, %73 : vector<8x32xf32>
    %75 = vector.extract_strided_slice %3 {offsets = [0, 24], sizes = [8, 8], strides = [1, 1]} : vector<8x32xf32> to vector<8x8xf32>
    %76 = vector.shape_cast %75 : vector<8x8xf32> to vector<1x8x8xf32>
    %77 = vector.extract_strided_slice %5 {offsets = [0, 24], sizes = [8, 8], strides = [1, 1]} : vector<8x32xf32> to vector<8x8xf32>
    %78 = vector.shape_cast %77 : vector<8x8xf32> to vector<1x8x8xf32>
    %79 = vector.extract_strided_slice %7 {offsets = [0, 24], sizes = [8, 8], strides = [1, 1]} : vector<8x32xf32> to vector<8x8xf32>
    %80 = vector.shape_cast %79 : vector<8x8xf32> to vector<1x8x8xf32>
    "tpu.trace_start"() <{level = 10 : i32, message = "bnd,bmd->bnm"}> : () -> ()
    %cst_33 = arith.constant dense<0.000000e+00> : vector<1x8x8xf32>
    %81 = tpu.matmul %76, %78, %cst_33 {dimension_numbers = #tpu.dot_dimension_numbers<[2], [2], [1], [1], [0, 0, 0, 1, 1, 1], [0], [0]>} : vector<1x8x8xf32>, vector<1x8x8xf32>, vector<1x8x8xf32> -> vector<1x8x8xf32>
    "tpu.trace_stop"() : () -> ()
    %cst_34 = arith.constant dense<0xFF800000> : vector<1x8xf32>
    %82 = vector.multi_reduction <maximumf>, %81, %cst_34 [2] : vector<1x8x8xf32> to vector<1x8xf32>
    %83 = vector.shape_cast %82 : vector<1x8xf32> to vector<1x8x1xf32>
    %84 = vector.broadcast %83 : vector<1x8x1xf32> to vector<1x8x8xf32>
    %85 = arith.subf %81, %84 : vector<1x8x8xf32>
    %86 = math.exp %85 : vector<1x8x8xf32>
    %cst_35 = arith.constant dense<0.000000e+00> : vector<1x8xf32>
    %87 = vector.multi_reduction <add>, %86, %cst_35 [2] : vector<1x8x8xf32> to vector<1x8xf32>
    %88 = vector.shape_cast %87 : vector<1x8xf32> to vector<1x8x1xf32>
    %89 = vector.broadcast %88 : vector<1x8x1xf32> to vector<1x8x8xf32>
    %90 = arith.divf %86, %89 : vector<1x8x8xf32>
    "tpu.trace_start"() <{level = 10 : i32, message = "bnm,bmd->bnd"}> : () -> ()
    %cst_36 = arith.constant dense<0.000000e+00> : vector<1x8x8xf32>
    %91 = tpu.matmul %90, %80, %cst_36 {dimension_numbers = #tpu.dot_dimension_numbers<[2], [1], [1], [2], [0, 0, 0, 1, 1, 2], [0], [0]>} : vector<1x8x8xf32>, vector<1x8x8xf32>, vector<1x8x8xf32> -> vector<1x8x8xf32>
    "tpu.trace_stop"() : () -> ()
    %92 = vector.shape_cast %91 : vector<1x8x8xf32> to vector<8x8xf32>
    %c3 = arith.constant 3 : index
    %c0_37 = arith.constant 0 : index
    %c0_38 = arith.constant 0 : index
    %93 = vector.load %arg5[%c3, %c0_37, %c0_38] : memref<4x8x32xf32, #tpu.memory_space<vmem>>, vector<1x8x32xf32>
    %94 = vector.shape_cast %93 : vector<1x8x32xf32> to vector<8x32xf32>
    %cst_39 = arith.constant dense<0.000000e+00> : vector<8x32xf32>
    %95 = tpu.matmul %92, %94, %cst_39 {dimension_numbers = #tpu.dot_dimension_numbers<[1], [0], [0], [1], [0, 0, 1, 1], [], []>} : vector<8x8xf32>, vector<8x32xf32>, vector<8x32xf32> -> vector<8x32xf32>
    %96 = arith.addf %74, %95 : vector<8x32xf32>
    %c0_40 = arith.constant 0 : index
    %c0_41 = arith.constant 0 : index
    %97 = vector.load %arg6[%c0_40, %c0_41] : memref<1x32xf32, #tpu.memory_space<vmem>>, vector<1x32xf32>
    %98 = vector.shape_cast %97 : vector<1x32xf32> to vector<32xf32>
    %99 = vector.shape_cast %98 : vector<32xf32> to vector<1x32xf32>
    %100 = vector.broadcast %99 : vector<1x32xf32> to vector<8x32xf32>
    %101 = arith.addf %96, %100 : vector<8x32xf32>
    %102 = vector.shape_cast %101 : vector<8x32xf32> to vector<1x8x32xf32>
    %c0_42 = arith.constant 0 : index
    %c0_43 = arith.constant 0 : index
    %c0_44 = arith.constant 0 : index
    %103 = vector.load %arg7[%c0_42, %c0_43, %c0_44] : memref<1x8x32xf32, #tpu.memory_space<vmem>>, vector<1x8x32xf32>
    tpu.vector_store %arg7[%c0_42, %c0_43, %c0_44], %102 {strides = array<i32>} : memref<1x8x32xf32, #tpu.memory_space<vmem>>, vector<1x8x32xf32>,
    return
  }
  func.func @transform_0(%arg0: i32) -> (i32, i32, i32) {
    %c0_i32 = arith.constant 0 : i32
    %c0_i32_0 = arith.constant 0 : i32
    %c0_i32_1 = arith.constant 0 : i32
    return %arg0, %c0_i32, %c0_i32_0 : i32, i32, i32
  }
  func.func @transform_1(%arg0: i32) -> (i32, i32) {
    %c0_i32 = arith.constant 0 : i32
    %c0_i32_0 = arith.constant 0 : i32
    %c0_i32_1 = arith.constant 0 : i32
    return %c0_i32, %c0_i32_0 : i32, i32
  }
  func.func @transform_2(%arg0: i32) -> (i32, i32) {
    %c0_i32 = arith.constant 0 : i32
    %c0_i32_0 = arith.constant 0 : i32
    %c0_i32_1 = arith.constant 0 : i32
    return %c0_i32, %c0_i32_0 : i32, i32
  }
  func.func @transform_3(%arg0: i32) -> (i32, i32) {
    %c0_i32 = arith.constant 0 : i32
    %c0_i32_0 = arith.constant 0 : i32
    %c0_i32_1 = arith.constant 0 : i32
    return %c0_i32, %c0_i32_0 : i32, i32
  }
  func.func @transform_4(%arg0: i32) -> (i32, i32, i32) {
    %c0_i32 = arith.constant 0 : i32
    %c0_i32_0 = arith.constant 0 : i32
    %c0_i32_1 = arith.constant 0 : i32
    %c0_i32_2 = arith.constant 0 : i32
    return %c0_i32, %c0_i32_0, %c0_i32_1 : i32, i32, i32
  }
  func.func @transform_5(%arg0: i32) -> (i32, i32) {
    %c0_i32 = arith.constant 0 : i32
    %c0_i32_0 = arith.constant 0 : i32
    %c0_i32_1 = arith.constant 0 : i32
    return %c0_i32, %c0_i32_0 : i32, i32
  }
  func.func @transform_6(%arg0: i32) -> (i32, i32, i32) {
    %c0_i32 = arith.constant 0 : i32
    %c0_i32_0 = arith.constant 0 : i32
    %c0_i32_1 = arith.constant 0 : i32
    return %arg0, %c0_i32, %c0_i32_0 : i32, i32, i32
  }
}

</mosaic_0001>

<bundles_post_ra>
// kernel: tpu_custom_call.1
= control target key start
LH: loop header
LB: loop body
LE: loop exit
PB: predicated region body
PF: predicated region fallthrough
CT: control target
= control target key end

     0   :  { %11 = vsyncpa [#allocation3], 0  ;;  %s2599_s0 = inlined_call_operand.hbm [shape: f32[2,8,32], index: 0, kind: input, shape index: {}]   ;;  %s2600_s1 = inlined_call_operand.hbm [shape: f32[32,32], index: 1, kind: input, shape index: {}]   ;;  %s2601_s2 = inlined_call_operand.hbm [shape: f32[32,32], index: 2, kind: input, shape index: {}]   ;;  %s2602_s3 = inlined_call_operand.hbm [shape: f32[32,32], index: 3, kind: input, shape index: {}]   ;;  %s2603_s4 = inlined_call_operand.hbm [shape: f32[4,8,32], index: 4, kind: input, shape index: {}]   ;;  %s2604_s5 = inlined_call_operand.vmem [shape: f32[1,32], index: 5, kind: input, shape index: {}]   ;;  %s2605_s6 = inlined_call_operand.hbm [shape: f32[2,8,32], index: 6, kind: output, shape index: {}]  }
   0x1   :  { %13 = vsyncpa [#allocation3 + $0x1], 0 }
   0x2   :  { %14 = vsyncpa [#allocation6], 0 }
   0x3   :  { %15 = vsyncpa [#allocation9], 0 }
   0x4   :  { %16 = vsyncpa [#allocation4], 0 }
   0x5   :  { %18 = vsyncpa [#allocation4 + $0x1], 0  ;;  %s2209_s21 = smov 0   ;;  %s2211_s22 = smov 0  }
   0x6   :  { %s2213_s23 = smov 0   ;;  %s2215_s24 = smov 0  }
   0x7 LB: > { %s2160_s25 = smov [#allocation5]   ;;  %s2230_s27 = sadd.s32 4294967295, %s2158_s24   ;;  %s2158_s24 = sphi %s2215_s24, %s2629_s24   ;;  %s2154_s23 = sphi %s2213_s23, %s2628_s23   ;;  %s2150_s22 = sphi %s2211_s22, %s2627_s22   ;;  %s2146_s21 = sphi %s2209_s21, %s2626_s21  }
   0x8   : > { %s198_s26 = sshll.u32 %s2160_s25, 4  ;;  %p1642_p0 = scmp.ge.s32.totalorder %s2158_s24, 1  ;;  %s2235_s26 = int_to_ptr.vmem [resolvable:$true] %s198_s26 }
   0x9   : > { %p2606_p1 = scmp.eq.s32.totalorder %s2230_s27, 0  ;;  %p186_p2 = scmp.lt.s32.totalorder %s2158_s24, 3 }
   0xa   : > { %s2161_s29 = smov [#allocation8]   ;;  %s2162_s8 = smov [#allocation7]  }
   0xb   : > { %p2237_p3 = pnand %p1642_p0, %p186_p2  ;;  %s224_s30 = sshll.u32 %s2161_s29, 4  ;;  %s2250_s30 = int_to_ptr.vmem [resolvable:$true] %s224_s30 }
   0xc   : > { %s211_s9 = sshll.u32 %s2162_s8, 4  ;;  %s1942_s12 = scalar_lea.hbm %s2600_s1, 512  ;;  %s2252_s9 = int_to_ptr.vmem [resolvable:$true] %s211_s9 }
   0xd   : > { %s2609_s28 = scalar_select %p2237_p3, 1, 0 }
   0xe   : > { %p1851_p5 = pneg %p2237_p3  ;;  %p1943_p7 = scmp.ne.s32.totalorder %s2600_s1, %s1942_s12 }
   0xf   : > { %p1949_p11 = scmp.lt.u32.totalorder %s1942_s12, %s2600_s1 }
  0x10   : > { %p2246_p6 = pnand %p1851_p5, %p2606_p1 }
  0x12   : > { %p2262_p8 = pneg %p2246_p6 }
  0x14   : > { %p1945_p9 = pnand %p2262_p8, %p1943_p7 }
  0x16   : > { %p1946_p10 = pneg %p1945_p9 }
  0x18   : > { %p1951_p12 = pnand %p1949_p11, %p1946_p10 }
  0x1a   : > { %1954 = shalt.err (!%p1951_p12)
}
  0x1b   : > { %s1955_s18 = scalar_lea.vmem %s2235_s26, 512  ;;  %p1963_p5 = scmp.lt.s32.totalorder %s2235_s26, %s2235_s26 }
  0x1c   : > { %p1956_p13 = scmp.ne.s32.totalorder %s2235_s26, %s1955_s18  ;;  %p1964_p4 = scmp.lt.s32.totalorder %s1955_s18, %s1955_s18 }
  0x1e   : > { %p1958_p0 = pnand %p1956_p13, %p2262_p8  ;;  %p1965_p7 = por %p1964_p4, %p1963_p5 }
  0x20   : > { %p1959_p2 = pneg %p1958_p0 }
  0x22   : > { %p1966_p9 = pnand %p1965_p7, %p1959_p2 }
  0x24   : > { %1969 = shalt.err (!%p1966_p9)
}
  0x25   : > { %s2163_s19 = smov 128   ;;  %s2164_s20 = smov 8  }
  0x26   : > { %1854 = dma.hbm_to_vmem [thread:$0]  (!%p2246_p6), %s2600_s1, 512, %s2235_s26, [#allocation6], %s2163_s19, %s2163_s19, %s2164_s20  }
  0x27   : > { %s1970_s11 = scalar_lea.hbm %s2602_s3, 512 }
  0x28   : > { %p1971_p4 = scmp.ne.s32.totalorder %s2602_s3, %s1970_s11  ;;  %p1977_p12 = scmp.lt.u32.totalorder %s1970_s11, %s2602_s3 }
  0x2a   : > { %p1973_p10 = pnand %p1971_p4, %p2262_p8 }
  0x2c   : > { %p1974_p11 = pneg %p1973_p10 }
  0x2e   : > { %p1979_p13 = pnand %p1977_p12, %p1974_p11 }
  0x30   : > { %1982 = shalt.err (!%p1979_p13)
}
  0x31   : > { %s1983_s26 = scalar_lea.vmem %s2250_s30, 512  ;;  %p1991_p7 = scmp.lt.s32.totalorder %s2250_s30, %s2250_s30 }
  0x32   : > { %p1984_p0 = scmp.ne.s32.totalorder %s2250_s30, %s1983_s26  ;;  %p1992_p9 = scmp.lt.s32.totalorder %s1983_s26, %s1983_s26 }
  0x34   : > { %p1986_p2 = pnand %p1984_p0, %p2262_p8  ;;  %p1993_p4 = por %p1992_p9, %p1991_p7 }
  0x36   : > { %p1987_p5 = pneg %p1986_p2 }
  0x38   : > { %p1994_p10 = pnand %p1993_p4, %p1987_p5 }
  0x3a   : > { %1997 = shalt.err (!%p1994_p10)
}
  0x3b   : > { %1860 = dma.hbm_to_vmem [thread:$0]  (!%p2246_p6), %s2602_s3, 512, %s2250_s30, [#allocation9], %s2163_s19, %s2163_s19, %s2164_s20  }
  0x3c   : > { %s1998_s8 = scalar_lea.hbm %s2601_s2, 512 }
  0x3d   : > { %p1999_p11 = scmp.ne.s32.totalorder %s2601_s2, %s1998_s8  ;;  %p2005_p0 = scmp.lt.u32.totalorder %s1998_s8, %s2601_s2 }
  0x3f   : > { %p2001_p12 = pnand %p1999_p11, %p2262_p8 }
  0x41   : > { %p2002_p13 = pneg %p2001_p12 }
  0x43   : > { %p2007_p2 = pnand %p2005_p0, %p2002_p13 }
  0x45   : > { %2010 = shalt.err (!%p2007_p2)
}
  0x46   : > { %s2011_s30 = scalar_lea.vmem %s2252_s9, 512  ;;  %p2019_p4 = scmp.lt.s32.totalorder %s2252_s9, %s2252_s9 }
  0x47   : > { %p2012_p5 = scmp.ne.s32.totalorder %s2252_s9, %s2011_s30  ;;  %p2020_p10 = scmp.lt.s32.totalorder %s2011_s30, %s2011_s30 }
  0x49   : > { %p2014_p7 = pnand %p2012_p5, %p2262_p8  ;;  %p2021_p11 = por %p2020_p10, %p2019_p4 }
  0x4b   : > { %p2015_p9 = pneg %p2014_p7 }
  0x4d   : > { %p2022_p12 = pnand %p2021_p11, %p2015_p9 }
  0x4f   : > { %2025 = shalt.err (!%p2022_p12)
}
  0x50   : > { %1857 = dma.hbm_to_vmem [thread:$0]  (!%p2246_p6), %s2601_s2, 512, %s2252_s9, [#allocation6], %s2163_s19, %s2163_s19, %s2164_s20  }
  0x51   : > { %s2165_s26 = smov [#allocation10]   ;;  %s2026_s29 = scalar_lea.hbm %s2603_s4, 512 }
  0x52   : > { %s237_s17 = sshll.u32 %s2165_s26, 4  ;;  %p2027_p13 = scmp.ne.s32.totalorder %s2603_s4, %s2026_s29  ;;  %s238_s17 = int_to_ptr.vmem [resolvable:$true] %s237_s17 }
  0x53   : > { %p2033_p5 = scmp.lt.u32.totalorder %s2026_s29, %s2603_s4 }
  0x54   : > { %p2029_p0 = pnand %p2027_p13, %p2262_p8 }
  0x56   : > { %p2030_p2 = pneg %p2029_p0 }
  0x58   : > { %p2035_p7 = pnand %p2033_p5, %p2030_p2 }
  0x5a   : > { %2038 = shalt.err (!%p2035_p7)
}
  0x5b   : > { %s2039_s9 = scalar_lea.vmem %s238_s17, 512  ;;  %p2047_p11 = scmp.lt.s32.totalorder %s238_s17, %s238_s17 }
  0x5c   : > { %p2040_p9 = scmp.ne.s32.totalorder %s238_s17, %s2039_s9  ;;  %p2048_p12 = scmp.lt.s32.totalorder %s2039_s9, %s2039_s9 }
  0x5e   : > { %p2042_p4 = pnand %p2040_p9, %p2262_p8  ;;  %p2049_p1 = por %p2048_p12, %p2047_p11 }
  0x60   : > { %p2043_p10 = pneg %p2042_p4 }
  0x62   : > { %p2050_p3 = pnand %p2049_p1, %p2043_p10 }
  0x64   : > { %2053 = shalt.err (!%p2050_p3)
}
  0x65   : > { %1863 = dma.hbm_to_vmem [thread:$0]  (!%p2246_p6), %s2603_s4, 512, %s238_s17, [#allocation9], %s2163_s19, %s2163_s19, %s2164_s20  }
  0x66   : > { %s1641_s7 = sadd.s32 4294967294, %s2158_s24   ;;  %s2361_s15 = sadd.s32 1, %s2158_s24  }
  0x67   : > { %s28_s14 = ssub.s32 %s2158_s24, %s2361_s15  ;;  %s31_s16 = sadd.s32 1, %s2154_s23 }
  0x68   : > { %p29_p1 = scmp.eq.s32.totalorder %s28_s14, 0  ;;  %p38_p3 = scmp.ne.s32.totalorder %s2154_s23, %s2150_s22 }
  0x69   : > { %p39_p8 = scmp.eq.s32.totalorder %s2158_s24, 0  ;;  %p44_p13 = scmp.ne.s32.totalorder %s2150_s22, %s2146_s21 }
  0x6a   : > { %s2372_s26 = scalar_select %p29_p1, %s2154_s23, %s31_s16  }
  0x6b   : > { %p2374_p0 = por %p39_p8, %p38_p3  ;;  %p2613_p2 = scmp.eq.s32.totalorder %s2230_s27, 0 }
  0x6c   : > { %p173_p5 = scmp.eq.s32.totalorder %s2230_s27, 1  ;;  %p179_p7 = scmp.eq.s32.totalorder %s1641_s7, 1 }
  0x6d   : > { %p2380_p6 = por %p2613_p2, %p44_p13  ;;  %p1876_p9 = scmp.lt.s32.totalorder %s2158_s24, 2 }
  0x6e   : > { %s254_s20 = sand.u32 1, %s2154_s23   ;;  %p2387_p4 = por %p173_p5, %p38_p3 }
  0x6f   : > { %p2391_p10 = por %p179_p7, %p44_p13  ;;  %s1648_s29 = sshll.u32 %s254_s20, 3 }
  0x70   : > { %s2615_s17 = scalar_select %p2387_p4, 1, 0 }
  0x71   : > { %s2616_s25 = scalar_select %p2391_p10, 1, 0 }
  0x72   : > { %s1649_s8 = sshll.u32 %s2158_s24, 7  ;;  %s258_s9 = scalar_lea.vmem [#allocation2], %s1648_s29 }
  0x73   : > { %s2399_s12 = scalar_lea.hbm %s2599_s0, %s1649_s8  ;;  %s265_s13 = sshll.u32 %s258_s9, 4  ;;  %s2401_s13 = int_to_ptr.vmem [resolvable:$true] %s265_s13 }
  0x74   : > { %p2405_p11 = pnand %p1876_p9, %p2374_p0  ;;  %s255_s7 = scalar_lea.sflag [#allocation3], %s254_s20 }
  0x75   : > { %s2054_s14 = scalar_lea.hbm %s2399_s12, 128  ;;  %s2059_s8 = scalar_lea.hbm %s2599_s0, 256 }
  0x76   : > { %p2055_p12 = scmp.ne.s32.totalorder %s2399_s12, %s2054_s14  ;;  %p2056_p1 = pneg %p2405_p11 }
  0x77   : > { %p2060_p13 = scmp.lt.u32.totalorder %s2399_s12, %s2599_s0  ;;  %p2061_p0 = scmp.lt.u32.totalorder %s2059_s8, %s2054_s14 }
  0x78   : > { %p2057_p3 = pnand %p2056_p1, %p2055_p12  ;;  %p2063_p5 = scmp.lt.u32.totalorder %s2054_s14, %s2399_s12 }
  0x79   : > { %p2062_p2 = por %p2061_p0, %p2060_p13 }
  0x7a   : > { %p2058_p8 = pneg %p2057_p3 }
  0x7b   : > { %p2064_p7 = por %p2063_p5, %p2062_p2 }
  0x7d   : > { %p2065_p9 = pnand %p2064_p7, %p2058_p8 }
  0x7f   : > { %2068 = shalt.err (!%p2065_p9)
}
  0x80   : > { %s2069_s20 = scalar_lea.vmem %s2401_s13, 128  ;;  %s2166_s11 = smov [#allocation2]  }
  0x81   : > { %p2070_p12 = scmp.ne.s32.totalorder %s2401_s13, %s2069_s20  ;;  %s2074_s9 = sshll.u32 %s2166_s11, 4  ;;  %s2075_s9 = int_to_ptr.vmem [resolvable:$false] %s2074_s9 }
  0x82   : > { %s2076_s16 = scalar_lea.vmem %s2075_s9, 256  ;;  %p2077_p4 = scmp.lt.s32.totalorder %s2401_s13, %s2075_s9 }
  0x83   : > { %p2072_p3 = pnand %p2070_p12, %p2056_p1  ;;  %p2078_p13 = scmp.lt.s32.totalorder %s2076_s16, %s2069_s20 }
  0x85   : > { %p2073_p10 = pneg %p2072_p3  ;;  %p2079_p0 = por %p2078_p13, %p2077_p4 }
  0x87   : > { %p2080_p2 = pnand %p2079_p0, %p2073_p10 }
  0x89   : > { %2083 = shalt.err (!%p2080_p2)
}
  0x8a   : > { %1867 = dma.hbm_to_vmem [thread:$0]  (!%p2405_p11), %s2399_s12, 128, %s2401_s13, %s255_s7  }
  0x8b   : > { %p2618_p8 = scmp.ne.s32.totalorder %s2609_s28, 0 }
  0x8c   : > { %s2437_s14 = sand.u32 (!%p2618_p8), 1, %s2150_s22  }
  0x8d   : > { %274 = sbr.rel (%p2618_p8) target bundleno = 2736 (0xab0), region = 44  ;;  %s1651_s29 = sshll.u32 (!%p2618_p8), %s2437_s14, 3 }
  0x8e   : > { %s277_s8 = scalar_lea.sflag (!%p2618_p8), [#allocation3], %s2437_s14  ;;  %s2443_s18 = scalar_lea.vmem (!%p2618_p8), [#allocation2], %s1651_s29 }
  0x94   : > { %2129 = dma.done.wait (%p2380_p6), %s277_s8, 128  }
  0x95   : > { %2131 = vsyncadd (%p2380_p6), %s277_s8, 4294967168  ;;  %p2619_p4 = scmp.eq.s32.totalorder %s2230_s27, 0 }
  0x97   : > { %2133 = dma.done.wait (%p2619_p4), [#allocation6], 1024   ;;  %p2620_p10 = pmov %p2619_p4 }
  0x98   : > { %p2621_p11 = pmov %p2619_p4 }
  0x99   : > { %2135 = vsyncadd (%p2620_p10), [#allocation6], 4294966272 }
  0x9a   : > { %2137 = dma.done.wait (%p2621_p11), [#allocation9], 1024   ;;  %p2622_p1 = pmov %p2619_p4 }
  0x9b   : > { %v2167_v0 = vmov 0.0|0.0   ;;  %vm2168_vm0 = vmmov 0   ;;  %v2169_v1 = vmov 0.0   ;;  %v404_v2 = vld [vmem:[#allocation7] sm:$0xff]  ;;  %v405_v3 = vld [vmem:[#allocation7 + $0x8] sm:$0xff]  ;;  %v406_v7 = vld [vmem:[#allocation7 + $0x10] sm:$0xff] }
  0x9c   : > { %2139 = vsyncadd (%p2622_p1), [#allocation9], 4294966272  ;;  %1819 = vmatprep.subr.bf16.mxu1 %v2167_v0  ;;  %1813 = vmatprep.subr.bf16.mxu0 %v2167_v0  ;;  %v326_v4 = vld [vmem:[#allocation5] sm:$0xff]  ;;  %v1820_v5 = vpack.c.bf16 %v405_v3, %v404_v2  ;;  %v327_v6 = vld [vmem:[#allocation5 + $0x8] sm:$0xff]  ;;  %vm330_vm1 = vcmask 261120   ;;  %vm552_vm2 = vcmask 64512  }
  0x9d   : > { %1739 = vmatprep.mubr.msk.f32.mxu1 %vm2168_vm0, %v2169_v1  ;;  %1728 = vmatprep.mubr.msk.f32.mxu0 %vm2168_vm0, %v2169_v1  ;;  %v407_v8 = vld [vmem:[#allocation7 + $0x18] sm:$0xff]  ;;  %v1814_v9 = vpack.c.bf16 %v327_v6, %v326_v4  ;;  %v328_v10 = vld [vmem:[#allocation5 + $0x10] sm:$0xff]  ;;  %v478_v15 = vld [vmem:[#allocation8] sm:$0xff]  ;;  %s2170_s28 = smov 120   ;;  %s2171_s19 = smov 112  }
  0x9e   : > { %v329_v11 = vld [vmem:[#allocation5 + $0x18] sm:$0xff]  ;;  %1821 = vmatpush3.bf16.msra.mxu1 %v1820_v5  ;;  %v1823_v12 = vpack.c.bf16 %v407_v8, %v406_v7  ;;  %v479_v16 = vld [vmem:[#allocation8 + $0x8] sm:$0xff]  ;;  %v480_v17 = vld [vmem:[#allocation8 + $0x10] sm:$0xff]  ;;  %s2172_s12 = smov 104   ;;  %s1678_s7 = sshll.u32 %s2230_s27, 7 }
  0x9f   : > { %1815 = vmatpush3.bf16.msra.mxu0 %v1814_v9  ;;  %1822 = vmatprep.subr.bf16.mxu1 %v2167_v0  ;;  %v1817_v13 = vpack.c.bf16 %v329_v11, %v328_v10  ;;  %v325_v14 = vld [vmem:[%s2443_s18] sm:$0xff]  ;;  %v1826_v18 = vpack.c.bf16 %v479_v16, %v478_v15  ;;  %v881_v48 = vld [vmem:[#allocation10 + $0x8] sm:$0xff]  ;;  %v713_v53 = vld [vmem:[#allocation10] sm:$0xff]  ;;  %s324_s10 = scalar_lea.vmem [#allocation11], %s1651_s29  ;;  %s2554_s16 = scalar_lea.hbm %s2605_s6, %s1678_s7 }
  0xa0   : > { %1816 = vmatprep.subr.bf16.mxu0 %v2167_v0  ;;  %v481_v19 = vld [vmem:[#allocation8 + $0x18] sm:$0xff]  ;;  %v1194_v16 = vld [vmem:[#allocation10 + $0x10] sm:$0xff]  ;;  %s1533_s20 = sshll.u32 %s324_s10, 4  ;;  %s1520_s8 = scalar_lea.sflag [#allocation4], %s2437_s14  ;;  %s2556_s20 = int_to_ptr.vmem [resolvable:$true] %s1533_s20 }
  0xa1   : > { %v1829_v20 = vpack.c.bf16 %v481_v19, %v480_v17  ;;  %s2084_s27 = scalar_lea.vmem %s2556_s20, 128  ;;  %p2623_p5 = scmp.ne.s32.totalorder %s2615_s17, 0 }
  0xa2   : > { %1824 = vmatpush3.bf16.msra.mxu1 %v1823_v12  ;;  %p2085_p6 = scmp.ne.s32.totalorder %s2556_s20, %s2084_s27  ;;  %s2173_s29 = smov [#allocation11]  }
  0xa3   : > { %1818 = vmatpush3.bf16.msra.mxu0 %v1817_v13  ;;  %1753 = vmatprep.subr.mxu1 %v2169_v1  ;;  %s2088_s18 = sshll.u32 %s2173_s29, 4  ;;  %s2089_s18 = int_to_ptr.vmem [resolvable:$false] %s2088_s18 }
  0xa4   : > { %1825 = vmatprep.subr.bf16.mxu0 %v2167_v0  ;;  %p2086_p7 = pnand %p2085_p6, %p2623_p5  ;;  %p2091_p12 = scmp.lt.s32.totalorder %s2556_s20, %s2089_s18 }
  0xa5   : > { %1740 = vmatmul.mubr.msk.f32.vlgmr.msra.gmra.mrb[0].mxu1 %vm330_vm1, %v325_v14 }
  0xa6   : > { %1729 = vmatmul.mubr.msk.f32.vlgmr.msra.gmra.mrb[0].mxu0 %vm330_vm1, %v325_v14  ;;  %1755 = vmatprep.mubr.msk.f32.mxu1 %vm2168_vm0, %v2169_v1  ;;  %p2087_p9 = pneg %p2086_p7 }
  0xa7   : > { %1750 = vmatprep.mubr.msk.f32.mxu0 %vm2168_vm0, %v2169_v1  ;;  %1827 = vmatpush3.bf16.msra.mxu0 %v1826_v18 }
  0xa8   : > { %1828 = vmatprep.subr.bf16.mxu0 %v2167_v0 }
  0xab   : > { %1830 = vmatpush3.bf16.msra.mxu0 %v1829_v20 }
  0xac   : > { %1763 = vmatprep.subr.mxu0 %v2169_v1 }
  0xae   : > { %1751 = vmatmul.mubr.msk.f32.vlgmr.msra.gmra.mrb[2].mxu0 %vm330_vm1, %v325_v14 }
  0xaf   : > { %1765 = vmatprep.mubr.msk.f32.mxu0 %vm2168_vm0, %v2169_v1 }
 0x178   : > { %v474_v21 = vpop.f32.mrb[0].mxu1 }
 0x179   : > { %716 = vrot.lane.b32.xlu0 %v474_v21, %s2170_s28  ;;  %v1741_v22 = vpop.f32.mrb[1].mxu1  ;;  %1754 = vmatpush3.xpose.msk.msra.mxu1 %vm552_vm2, %v474_v21  ;;  %v2475_v23 = vpop.f32.mrb[0].mxu0 }
 0x17a   : > { %v1730_v24 = vpop.f32.mrb[1].mxu0  ;;  %1758 = vmatprep.subr.mxu1 %v2169_v1 }
 0x17c   : > { %1756 = vmatmul.mubr.msk.f32.vlgmr.msra.gmra.mrb[2].mxu1 %vm552_vm2, %v2475_v23 }
 0x17d   : > { %714 = vrot.lane.b32.xlu0 %v2475_v23, %s2170_s28  ;;  %1760 = vmatprep.mubr.msk.f32.mxu1 %vm2168_vm0, %v2169_v1 }
 0x181   : > { %v2484_v25 = vpop.f32.mrb[2].mxu0 }
 0x182   : > { %v1752_v26 = vpop.f32.mrb[3].mxu0  ;;  %1759 = vmatpush3.msra.mxu1 %v2484_v25 }
 0x183   : > { %1768 = vmatprep.subr.mxu1 %v2169_v1 }
 0x1eb   : > { %v717_v27 = vpop.permute.xlu0 %716 }
 0x1ec   : > { %1764 = vmatpush3.xpose.msk.msra.mxu0 %vm552_vm2, %v717_v27 }
 0x1ed   : > { %1773 = vmatprep.subr.mxu0 %v2169_v1 }
 0x1ef   : > { %v715_v28 = vpop.permute.xlu0 %714 }
 0x1f0   : > { %1766 = vmatmul.mubr.msk.f32.vlgmr.msra.gmra.mrb[4].mxu0 %vm552_vm2, %v715_v28  ;;  %v1435_v28 = vld [vmem:[#allocation10 + $0x18] sm:$0xff] }
 0x1f1   : > { %1775 = vmatprep.mubr.msk.f32.mxu0 %vm2168_vm0, %v2169_v1  ;;  %1774 = vmatpush3.msra.mxu0 %v881_v48 }
 0x1f2   : > { %1783 = vmatprep.subr.mxu0 %v2169_v1 }
 0x24f   : > { %v625_v29 = vpop.f32.mrb[2].mxu1 }
 0x250   : > { %v1757_v30 = vpop.f32.mrb[3].mxu1  ;;  %v629_v31 = vsel %vm552_vm2, %v625_v29, -inf }
 0x251   : > { %630 = vmax.xlane.f32.xlu1 %v629_v31 }
 0x2c3   : > { %v788_v32 = vpop.f32.mrb[4].mxu0 }
 0x2c4   : > { %v1767_v33 = vpop.f32.mrb[5].mxu0  ;;  %v792_v34 = vsel %vm552_vm2, %v788_v32, -inf }
 0x2c5   : > { %793 = vmax.xlane.f32.xlu1 %v792_v34 }
 0x2de   : > { %v631_v35 = vpop.xlane.xlu1 %630 }
 0x2df   : > { %v632_v36 = vsub.f32 %v625_v29, %v631_v35 }
 0x2e1   : > { %v633_v37 = vmul.f32 1.442695, %v632_v36 }
 0x2e3   : > { %1926 = vpow2.f32 %v633_v37  ;;  %v1676_v37 = vld [vmem:[%s2604_s5] ss:$0 sm:$0xff] }
 0x2ed   : > { %v1927_v38 = vpop.eup %1926 }
 0x2ee   : > { %v635_v39 = vsel %vm552_vm2, %v1927_v38, 0.0 }
 0x2ef   : > { %636 = vadd.xlane.f32.xlu0 %v635_v39 }
 0x305   : > { %1117 = vrot.lane.b32.xlu0 %v2484_v25, %s2171_s19 }
 0x309   : > { %1271 = vrot.lane.b32.xlu0 %v474_v21, %s2172_s12 }
 0x352   : > { %v794_v40 = vpop.xlane.xlu1 %793 }
 0x353   : > { %v795_v41 = vsub.f32 %v788_v32, %v794_v40 }
 0x355   : > { %v796_v42 = vmul.f32 1.442695, %v795_v41 }
 0x357   : > { %1928 = vpow2.f32 %v796_v42 }
 0x361   : > { %v1929_v43 = vpop.eup %1928 }
 0x362   : > { %v798_v44 = vsel %vm552_vm2, %v1929_v43, 0.0 }
 0x363   : > { %799 = vadd.xlane.f32.xlu1 %v798_v44 }
 0x374   : > { %804 = vrot.lane.b32.xlu1 %v2484_v25, %s2170_s28  ;;  %s2090_s28 = scalar_lea.vmem %s2089_s18, 256 }
 0x375   : > { %p2092_p3 = scmp.lt.s32.totalorder %s2090_s28, %s2084_s27 }
 0x377   : > { %p2093_p13 = por %p2092_p3, %p2091_p12 }
 0x378   : > { %1030 = vrot.lane.b32.xlu1 %v474_v21, %s2171_s19 }
 0x379   : > { %p2094_p0 = pnand %p2093_p13, %p2087_p9 }
 0x37c   : > { %v637_v45 = vpop.xlane.xlu0 %636  ;;  %1028 = vrot.lane.b32.xlu1 %v2475_v23, %s2171_s19 }
 0x37d   : > { %1930 = vrcp.f32 %v637_v45 }
 0x380   : > { %v1118_v55 = vpop.permute.xlu0 %1117 }
 0x384   : > { %v1272_v11 = vpop.permute.xlu0 %1271 }
 0x387   : > { %v1931_v46 = vpop.eup %1930 }
 0x388   : > { %v639_v47 = vmul.f32 %v1931_v46, %v1927_v38 }
 0x38a   : > { %1761 = vmatmul.mubr.msk.f32.vlgmr.msra.gmra.mrb[4].mxu1 %vm552_vm2, %v639_v47 }
 0x38b   : > { %1770 = vmatprep.mubr.msk.f32.mxu1 %vm2168_vm0, %v2169_v1 }
 0x3f0   : > { %v800_v49 = vpop.xlane.xlu1 %799 }
 0x3f1   : > { %1932 = vrcp.f32 %v800_v49 }
 0x3f4   : > { %v805_v50 = vpop.permute.xlu1 %804 }
 0x3f5   : > { %1769 = vmatpush3.msra.mxu1 %v805_v50 }
 0x3f6   : > { %1778 = vmatprep.subr.mxu1 %v2169_v1 }
 0x3f8   : > { %v1031_v57 = vpop.permute.xlu1 %1030 }
 0x3fb   : > { %v1933_v51 = vpop.eup %1932 }
 0x3fc   : > { %v802_v52 = vmul.f32 %v1933_v51, %v1929_v43  ;;  %v1029_v60 = vpop.permute.xlu1 %1028 }
 0x3fe   : > { %1771 = vmatmul.mubr.msk.f32.vlgmr.msra.gmra.mrb[6].mxu1 %vm552_vm2, %v802_v52 }
 0x3ff   : > { %1779 = vmatpush3.msra.mxu1 %v713_v53  ;;  %1780 = vmatprep.mubr.msk.f32.mxu1 %vm2168_vm0, %v2169_v1 }
 0x400   : > { %1788 = vmatprep.subr.mxu1 %v2169_v1 }
 0x45d   : > { %v709_v54 = vpop.f32.mrb[4].mxu1 }
 0x45e   : > { %v1762_v56 = vpop.f32.mrb[5].mxu1  ;;  %1781 = vmatmul.mubr.msk.f32.vlgmr.msra.gmra.mrb[8].mxu1 %vm552_vm2, %v709_v54 }
 0x45f   : > { %1789 = vmatpush3.msra.mxu1 %v1118_v55  ;;  %1790 = vmatprep.mubr.msk.f32.mxu1 %vm2168_vm0, %v2169_v1 }
 0x460   : > { %1798 = vmatprep.subr.mxu1 %v2169_v1 }
 0x4d1   : > { %v876_v58 = vpop.f32.mrb[6].mxu1 }
 0x4d2   : > { %v1772_v59 = vpop.f32.mrb[7].mxu1  ;;  %1776 = vmatmul.mubr.msk.f32.vlgmr.msra.gmra.mrb[6].mxu0 %vm552_vm2, %v876_v58 }
 0x4d3   : > { %1784 = vmatpush3.xpose.msk.msra.mxu0 %vm552_vm2, %v1031_v57  ;;  %1785 = vmatprep.mubr.msk.f32.mxu0 %vm2168_vm0, %v2169_v1 }
 0x4d4   : > { %1793 = vmatprep.subr.mxu0 %v2169_v1 }
 0x4d6   : > { %1786 = vmatmul.mubr.msk.f32.vlgmr.msra.gmra.mrb[8].mxu0 %vm552_vm2, %v1029_v60 }
 0x4d7   : > { %1795 = vmatprep.mubr.msk.f32.mxu0 %vm2168_vm0, %v2169_v1  ;;  %1794 = vmatpush3.msra.mxu0 %v1194_v16 }
 0x4d8   : > { %1803 = vmatprep.subr.mxu0 %v2169_v1 }
 0x531   : > { %v1024_v61 = vpop.f32.mrb[8].mxu1 }
 0x532   : > { %v1782_v62 = vpop.f32.mrb[9].mxu1 }
 0x5a5   : > { %v951_v63 = vpop.f32.mrb[6].mxu0 }
 0x5a6   : > { %v1025_v0 = vadd.f32 %v1024_v61, %v951_v63  ;;  %v1777_v2 = vpop.f32.mrb[7].mxu0 }
 0x5a9   : > { %v1102_v3 = vpop.f32.mrb[8].mxu0 }
 0x5aa   : > { %v1787_v4 = vpop.f32.mrb[9].mxu0  ;;  %v1106_v5 = vsel %vm552_vm2, %v1102_v3, -inf }
 0x5ab   : > { %1107 = vmax.xlane.f32.xlu1 %v1106_v5 }
 0x638   : > { %v1108_v6 = vpop.xlane.xlu1 %1107 }
 0x639   : > { %v1109_v7 = vsub.f32 %v1102_v3, %v1108_v6 }
 0x63b   : > { %v1110_v8 = vmul.f32 1.442695, %v1109_v7 }
 0x63d   : > { %1934 = vpow2.f32 %v1110_v8 }
 0x647   : > { %v1935_v9 = vpop.eup %1934 }
 0x648   : > { %v1112_v10 = vsel %vm552_vm2, %v1935_v9, 0.0 }
 0x649   : > { %1113 = vadd.xlane.f32.xlu0 %v1112_v10 }
 0x65f   : > { %1269 = vrot.lane.b32.xlu0 %v2475_v23, %s2172_s12 }
 0x6d6   : > { %v1114_v12 = vpop.xlane.xlu0 %1113 }
 0x6d7   : > { %1936 = vrcp.f32 %v1114_v12 }
 0x6da   : > { %v1270_v15 = vpop.permute.xlu0 %1269 }
 0x6e1   : > { %v1937_v13 = vpop.eup %1936 }
 0x6e2   : > { %v1116_v14 = vmul.f32 %v1937_v13, %v1935_v9 }
 0x6e4   : > { %1791 = vmatmul.mubr.msk.f32.vlgmr.msra.gmra.mrb[10].mxu1 %vm552_vm2, %v1116_v14 }
 0x6e5   : > { %1799 = vmatpush3.xpose.msk.msra.mxu1 %vm552_vm2, %v1272_v11  ;;  %1800 = vmatprep.mubr.msk.f32.mxu1 %vm2168_vm0, %v2169_v1 }
 0x6e6   : > { %1808 = vmatprep.subr.mxu1 %v2169_v1 }
 0x6e8   : > { %1801 = vmatmul.mubr.msk.f32.vlgmr.msra.gmra.mrb[12].mxu1 %vm552_vm2, %v1270_v15 }
 0x6e9   : > { %1810 = vmatprep.mubr.msk.f32.mxu1 %vm2168_vm0, %v2169_v1  ;;  %1809 = vmatpush3.msra.mxu1 %v1435_v28 }
 0x7b7   : > { %v1189_v17 = vpop.f32.mrb[10].mxu1 }
 0x7b8   : > { %v1792_v18 = vpop.f32.mrb[11].mxu1  ;;  %1796 = vmatmul.mubr.msk.f32.vlgmr.msra.gmra.mrb[10].mxu0 %vm552_vm2, %v1189_v17 }
 0x7b9   : > { %1805 = vmatprep.mubr.msk.f32.mxu0 %vm2168_vm0, %v2169_v1 }
 0x7bb   : > { %v1343_v19 = vpop.f32.mrb[12].mxu1 }
 0x7bc   : > { %v1802_v20 = vpop.f32.mrb[13].mxu1  ;;  %v1347_v21 = vsel %vm552_vm2, %v1343_v19, -inf }
 0x7bd   : > { %1348 = vmax.xlane.f32.xlu0 %v1347_v21 }
 0x84a   : > { %v1349_v22 = vpop.xlane.xlu0 %1348 }
 0x84b   : > { %v1350_v23 = vsub.f32 %v1343_v19, %v1349_v22 }
 0x84d   : > { %v1351_v24 = vmul.f32 1.442695, %v1350_v23 }
 0x84f   : > { %1938 = vpow2.f32 %v1351_v24 }
 0x859   : > { %v1939_v26 = vpop.eup %1938 }
 0x85a   : > { %v1353_v27 = vsel %vm552_vm2, %v1939_v26, 0.0 }
 0x85b   : > { %1354 = vadd.xlane.f32.xlu1 %v1353_v27 }
 0x86c   : > { %1358 = vrot.lane.b32.xlu1 %v2484_v25, %s2172_s12 }
 0x88b   : > { %v1264_v1 = vpop.f32.mrb[10].mxu0 }
 0x88c   : > { %v1268_v29 = vadd.f32 %v1264_v1, %v1025_v0  ;;  %v1797_v30 = vpop.f32.mrb[11].mxu0 }
 0x8e8   : > { %v1355_v31 = vpop.xlane.xlu1 %1354 }
 0x8e9   : > { %1940 = vrcp.f32 %v1355_v31 }
 0x8ec   : > { %v1359_v32 = vpop.permute.xlu1 %1358 }
 0x8ed   : > { %1804 = vmatpush3.msra.mxu0 %v1359_v32 }
 0x8f3   : > { %v1941_v33 = vpop.eup %1940 }
 0x8f4   : > { %v1357_v34 = vmul.f32 %v1941_v33, %v1939_v26 }
 0x8f6   : > { %1806 = vmatmul.mubr.msk.f32.vlgmr.msra.gmra.mrb[12].mxu0 %vm552_vm2, %v1357_v34 }
 0x9c9   : > { %v1430_v35 = vpop.f32.mrb[12].mxu0 }
 0x9ca   : > { %v1807_v36 = vpop.f32.mrb[13].mxu0  ;;  %1811 = vmatmul.mubr.msk.f32.vlgmr.msra.gmra.mrb[14].mxu1 %vm552_vm2, %v1430_v35 }
 0xa9d   : > { %v1505_v25 = vpop.f32.mrb[14].mxu1 }
 0xa9e   : > { %v1509_v38 = vadd.f32 %v1505_v25, %v1268_v29  ;;  %v1812_v39 = vpop.f32.mrb[15].mxu1 }
 0xaa0   : > { %v1517_v40 = vadd.f32 %v1676_v37, %v1509_v38 }
 0xaa2   : > { %1518 = vst.msk [vmem:[%s324_s10] sm:$0xff] %vm330_vm1, %v1517_v40 }
 0xaa3   : > { %2097 = shalt.err (!%p2094_p0)
}
 0xaa4   : > { %s2098_s14 = scalar_lea.hbm %s2554_s16, 128  ;;  %s2102_s13 = scalar_lea.hbm %s2605_s6, 256 }
 0xaa5   : > { %p2099_p2 = scmp.ne.s32.totalorder %s2554_s16, %s2098_s14  ;;  %p2103_p10 = scmp.lt.u32.totalorder %s2554_s16, %s2605_s6 }
 0xaa6   : > { %p2104_p11 = scmp.lt.u32.totalorder %s2102_s13, %s2098_s14  ;;  %p2106_p6 = scmp.lt.u32.totalorder %s2098_s14, %s2554_s16 }
 0xaa7   : > { %p2100_p8 = pnand %p2099_p2, %p2623_p5 }
 0xaa8   : > { %p2105_p1 = por %p2104_p11, %p2103_p10 }
 0xaa9   : > { %p2101_p4 = pneg %p2100_p8 }
 0xaaa   : > { %p2107_p7 = por %p2106_p6, %p2105_p1 }
 0xaac   : > { %p2108_p9 = pnand %p2107_p7, %p2101_p4 }
 0xaae   : > { %2111 = shalt.err (!%p2108_p9)
}
 0xaaf   : > { %1849 = dma.vmem_to_hbm [thread:$0]  (%p2623_p5), %s2556_s20, 128, %s2554_s16, %s1520_s8  }
 0xab0 PF: > { %s1545_s10 = sand.u32 1, %s2146_s21   ;;  %p2624_p12 = scmp.ne.s32.totalorder %s2616_s25, 0 }
 0xab1   : > { %p2625_p3 = scmp.ge.s32.totalorder %s2158_s24, 2  ;;  %s1546_s11 = scalar_lea.sflag [#allocation4], %s1545_s10 }
 0xab3   : > { %p1869_p13 = pnand %p2625_p3, %p2624_p12 }
 0xab5   : > { %2141 = dma.done.wait (!%p1869_p13), %s1546_s11, 128  }
 0xab6   : > { %2143 = vsyncadd (!%p1869_p13), %s1546_s11, 4294967168  ;;  %p21_p0 = scmp.ge.s32.totalorder %s2361_s15, 4   ;;  %s2626_s21 = smov %s2150_s22 }
 0xab7   : > { %s2627_s22 = smov %s2154_s23  ;;  %s2628_s23 = smov %s2372_s26 }
 0xab8   : > { %s2629_s24 = smov %s2361_s15  ;;  %23 = sbr.rel (!%p21_p0) target bundleno = 7 (0x7), region = 108 }
 0xabf   :  { %1551 = vsyncpa [#allocation3], 1 }
 0xac0   :  { %1553 = vsyncpa [#allocation3 + $0x1], 1 }
 0xac1   :  { %1554 = vsyncpa [#allocation6], 1 }
 0xac2   :  { %1555 = vsyncpa [#allocation9], 1 }
 0xac3   :  { %1556 = vsyncpa [#allocation4], 1 }
 0xac4   :  { %1558 = vsyncpa [#allocation4 + $0x1], 1 }

</bundles_post_ra>
